<compile_context>
chip_gen: v7x
topology: tpu7x:2x2x1
jax: 0.10.0
libtpu: 0.0.40
codegen_flags: <defaults>
</compile_context>

<pallas_src>
import functools

import jax
import jax.numpy as jnp
from jax.experimental import pallas as pl
from jax.experimental.pallas import tpu as pltpu

_LANES = 128
_MAX_BLOCK_ROWS = 2048   # 2048 * 128 * 4B = 1 MiB per input per pipeline buffer


def _rmsle_kernel(x_ref, y_ref, o_ref, acc_ref, *, rows, block_r,
                  steps_per_split, needs_mask):
    t = pl.program_id(1)

    @pl.when(t == 0)
    def _():
        acc_ref[...] = jnp.zeros_like(acc_ref)

    x = x_ref[...].astype(jnp.float32)
    y = y_ref[...].astype(jnp.float32)

    if needs_mask:
        # Rows past `rows` (boundary blocks / clamped duplicate blocks) must
        # contribute 0.  Mask the raw values so garbage never reaches log1p.
        s = pl.program_id(0)
        row0 = (s * steps_per_split + t) * block_r
        rid = jax.lax.broadcasted_iota(jnp.int32, (block_r, _LANES), 0) + row0
        valid = rid < rows
        x = jnp.where(valid, x, 0.0)
        y = jnp.where(valid, y, 0.0)

    d = jnp.log1p(x) - jnp.log1p(y)
    acc_ref[...] += d * d            # block-wide VPU adds; no per-step reduce

    @pl.when(t == pl.num_programs(1) - 1)
    def _():
        # Single deferred cross-lane/sublane reduce per split.
        o_ref[...] = jnp.sum(acc_ref[...], axis=(0, 1), keepdims=True)


def rmsle_loss(inputs: jax.Array, target: jax.Array) -> jax.Array:
    """Root mean squared log error, computed in a Pallas TPU kernel."""
    assert inputs.shape == target.shape, "input/target shapes must match"
    n = inputs.size
    if n == 0:   # mean over an empty tensor is NaN (matches torch MSELoss)
        return jnp.array(jnp.nan, dtype=jnp.float32)
    # TODO(synk): the PyTorch module asserts min() >= 0 at runtime; a
    # data-dependent host-side assert has no clean in-kernel equivalent.

    x = jnp.ravel(inputs)
    y = jnp.ravel(target)

    rows = pl.cdiv(n, _LANES)
    pad = rows * _LANES - n
    if pad:   # only when n % 128 != 0; padded zeros give log1p(0)-log1p(0)=0
        x = jnp.pad(x, (0, pad))
        y = jnp.pad(y, (0, pad))
    x2 = x.reshape(rows, _LANES)
    y2 = y.reshape(rows, _LANES)

    block_r = min(_MAX_BLOCK_ROWS, ((rows + 7) // 8) * 8)
    num_blocks = pl.cdiv(rows, block_r)
    num_splits = 2 if num_blocks >= 2 else 1       # feeds both v7x TCs
    steps = pl.cdiv(num_blocks, num_splits)
    needs_mask = (num_splits * steps * block_r) != rows

    if num_splits * steps == num_blocks:
        def in_map(s, t):
            return (s * steps + t, 0)
    else:
        # Clamp trailing dummy blocks to the last real block; their
        # contribution is zeroed by the in-kernel row mask.
        def in_map(s, t):
            return (jnp.minimum(s * steps + t, num_blocks - 1), 0)

    kernel = functools.partial(
        _rmsle_kernel, rows=rows, block_r=block_r,
        steps_per_split=steps, needs_mask=needs_mask)

    partials = pl.pallas_call(
        kernel,
        out_shape=jax.ShapeDtypeStruct((num_splits, 1), jnp.float32),
        grid_spec=pltpu.PrefetchScalarGridSpec(
            num_scalar_prefetch=0,
            grid=(num_splits, steps),
            in_specs=[
                pl.BlockSpec((block_r, _LANES), in_map),
                pl.BlockSpec((block_r, _LANES), in_map),
            ],
            out_specs=pl.BlockSpec((1, 1), lambda s, t: (s, 0)),
            scratch_shapes=[pltpu.VMEM((block_r, _LANES), jnp.float32)],
        ),
        compiler_params=pltpu.CompilerParams(
            dimension_semantics=("parallel", "arbitrary"),
            vmem_limit_bytes=32 * 1024 * 1024,
        ),
    )(x2, y2)

    # Tiny epilogue: combine per-split partial sums, divide by true n, sqrt.
    return jnp.sqrt(jnp.sum(partials) / n)


def _rmsle_ref(inputs, target):
    d = jnp.log1p(inputs.astype(jnp.float32)) - jnp.log1p(
        target.astype(jnp.float32))
    return jnp.sqrt(jnp.mean(d * d))


if __name__ == "__main__":
    # 1) Docstring example: expected ~0.3339.
    inp_small = jnp.array([0.6, 0.7, 0.3, 0.8], dtype=jnp.float32).reshape(-1, 1)
    tgt_small = jnp.array([1.0, 1.2, 0.0, 2.0], dtype=jnp.float32).reshape(-1, 1)
    out_small = jax.block_until_ready(rmsle_loss(inp_small, tgt_small))
    assert jnp.allclose(out_small, _rmsle_ref(inp_small, tgt_small), atol=1e-5), (
        out_small, _rmsle_ref(inp_small, tgt_small))
    assert abs(float(out_small) - 0.3339) < 2e-3, float(out_small)

    keys = jax.random.split(jax.random.PRNGKey(0), 6)

    # 2) NCHW-like shape (2,4,16,16): lane-aligned, single block.
    a = jax.random.uniform(keys[0], (2, 4, 16, 16), dtype=jnp.float32) * 3.0
    b = jax.random.uniform(keys[1], (2, 4, 16, 16), dtype=jnp.float32) * 3.0
    o = jax.block_until_ready(rmsle_loss(a, b))
    assert jnp.allclose(o, _rmsle_ref(a, b), rtol=1e-4, atol=1e-6), (
        o, _rmsle_ref(a, b))

    # 3) Ragged size (3,5,17) = 255 elems: exercises in-kernel tail masking.
    a = jax.random.uniform(keys[2], (3, 5, 17), dtype=jnp.float32) * 2.0
    b = jax.random.uniform(keys[3], (3, 5, 17), dtype=jnp.float32) * 2.0
    o = jax.block_until_ready(rmsle_loss(a, b))
    assert jnp.allclose(o, _rmsle_ref(a, b), rtol=1e-4, atol=1e-6), (
        o, _rmsle_ref(a, b))

    # 4) Multi-block, odd block count (rows=5000 -> 3 blocks over 2 splits):
    #    exercises the parallel split + clamped dummy-block + mask path.
    a = jax.random.uniform(keys[4], (50, 100, 128), dtype=jnp.float32) * 4.0
    b = jax.random.uniform(keys[5], (50, 100, 128), dtype=jnp.float32) * 4.0
    o = jax.block_until_ready(rmsle_loss(a, b))
    assert jnp.allclose(o, _rmsle_ref(a, b), rtol=1e-4, atol=1e-6), (
        o, _rmsle_ref(a, b))

    print("KERNEL_OK")
</pallas_src>

<mosaic_0001>
module attributes {stable_mosaic.version = 11 : i64} {
  func.func @_rmsle_kernel(%arg0: i32, %arg1: i32, %arg2: memref<8x128xf32, #tpu.memory_space<vmem>>, %arg3: memref<8x128xf32, #tpu.memory_space<vmem>>, %arg4: memref<1x1xf32, #tpu.memory_space<vmem>>, %arg5: memref<8x128xf32, #tpu.memory_space<vmem>>) attributes {dimension_semantics = [#tpu.dimension_semantics<parallel>, #tpu.dimension_semantics<arbitrary>], iteration_bounds = array<i64: 1, 1>, scalar_prefetch = 0 : i64, scratch_operands = 1 : i64, tpu.core_type = #tpu.core_type<tc>, window_params = [{transform_indices = @transform_0, window_bounds = array<i64: 8, 128>}, {transform_indices = @transform_1, window_bounds = array<i64: 8, 128>}, {transform_indices = @transform_2, window_bounds = array<i64: 1, 1>}]} {
    %c0_i32 = arith.constant 0 : i32
    %0 = arith.cmpi eq, %arg1, %c0_i32 : i32
    %1 = arith.extui %0 : i1 to i32
    %c0_i32_0 = arith.constant 0 : i32
    %2 = arith.cmpi ne, %1, %c0_i32_0 : i32
    scf.if %2 {
      %cst_12 = arith.constant 0.000000e+00 : f32
      %27 = vector.broadcast %cst_12 : f32 to vector<8x128xf32>
      %c0_13 = arith.constant 0 : index
      %c0_14 = arith.constant 0 : index
      %28 = vector.load %arg5[%c0_13, %c0_14] : memref<8x128xf32, #tpu.memory_space<vmem>>, vector<8x128xf32>
      tpu.vector_store %arg5[%c0_13, %c0_14], %27 {strides = array<i32>} : memref<8x128xf32, #tpu.memory_space<vmem>>, vector<8x128xf32>,
    } else {
    }
    %c0 = arith.constant 0 : index
    %c0_1 = arith.constant 0 : index
    %3 = vector.load %arg2[%c0, %c0_1] : memref<8x128xf32, #tpu.memory_space<vmem>>, vector<8x128xf32>
    %c0_2 = arith.constant 0 : index
    %c0_3 = arith.constant 0 : index
    %4 = vector.load %arg3[%c0_2, %c0_3] : memref<8x128xf32, #tpu.memory_space<vmem>>, vector<8x128xf32>
    %c1_i32 = arith.constant 1 : i32
    %5 = arith.muli %arg0, %c1_i32 : i32
    %6 = arith.addi %5, %arg1 : i32
    %c8_i32 = arith.constant 8 : i32
    %7 = arith.muli %6, %c8_i32 : i32
    %8 = tpu.iota {dimensions = array<i32: 0>} : vector<8x128xi32>
    %9 = vector.broadcast %7 : i32 to vector<8x128xi32>
    %10 = arith.addi %8, %9 : vector<8x128xi32>
    %c1_i32_4 = arith.constant 1 : i32
    %11 = vector.broadcast %c1_i32_4 : i32 to vector<8x128xi32>
    %12 = arith.cmpi slt, %10, %11 : vector<8x128xi32>
    %cst = arith.constant 0.000000e+00 : f32
    %13 = vector.broadcast %cst : f32 to vector<8x128xf32>
    %14 = arith.select %12, %3, %13 : vector<8x128xi1>, vector<8x128xf32>
    %cst_5 = arith.constant 0.000000e+00 : f32
    %15 = vector.broadcast %cst_5 : f32 to vector<8x128xf32>
    %16 = arith.select %12, %4, %15 : vector<8x128xi1>, vector<8x128xf32>
    %17 = math.log1p %14 : vector<8x128xf32>
    %18 = math.log1p %16 : vector<8x128xf32>
    %19 = arith.subf %17, %18 : vector<8x128xf32>
    %c0_6 = arith.constant 0 : index
    %c0_7 = arith.constant 0 : index
    %20 = vector.load %arg5[%c0_6, %c0_7] : memref<8x128xf32, #tpu.memory_space<vmem>>, vector<8x128xf32>
    %21 = arith.mulf %19, %19 : vector<8x128xf32>
    %22 = arith.addf %20, %21 : vector<8x128xf32>
    %c0_8 = arith.constant 0 : index
    %c0_9 = arith.constant 0 : index
    %23 = vector.load %arg5[%c0_8, %c0_9] : memref<8x128xf32, #tpu.memory_space<vmem>>, vector<8x128xf32>
    tpu.vector_store %arg5[%c0_8, %c0_9], %22 {strides = array<i32>} : memref<8x128xf32, #tpu.memory_space<vmem>>, vector<8x128xf32>,
    %c0_i32_10 = arith.constant 0 : i32
    %24 = arith.cmpi eq, %arg1, %c0_i32_10 : i32
    %25 = arith.extui %24 : i1 to i32
    %c0_i32_11 = arith.constant 0 : i32
    %26 = arith.cmpi ne, %25, %c0_i32_11 : i32
    scf.if %26 {
      %c0_12 = arith.constant 0 : index
      %c0_13 = arith.constant 0 : index
      %27 = vector.load %arg5[%c0_12, %c0_13] : memref<8x128xf32, #tpu.memory_space<vmem>>, vector<8x128xf32>
      %28 = vector.shape_cast %27 : vector<8x128xf32> to vector<1x8x128xf32>
      %cst_14 = arith.constant dense<0.000000e+00> : vector<1xf32>
      %29 = vector.multi_reduction <add>, %28, %cst_14 [1, 2] : vector<1x8x128xf32> to vector<1xf32>
      %30 = vector.shape_cast %29 : vector<1xf32> to vector<1x1x1xf32>
      %31 = vector.extract %30[0, 0, 0] : f32 from vector<1x1x1xf32>
      %32 = vector.broadcast %31 : f32 to vector<1x1xf32>
      %c0_15 = arith.constant 0 : index
      %c0_16 = arith.constant 0 : index
      %33 = vector.load %arg4[%c0_15, %c0_16] : memref<1x1xf32, #tpu.memory_space<vmem>>, vector<1x1xf32>
      tpu.vector_store %arg4[%c0_15, %c0_16], %32 {strides = array<i32>} : memref<1x1xf32, #tpu.memory_space<vmem>>, vector<1x1xf32>,
    } else {
    }
    return
  }
  func.func @transform_0(%arg0: i32, %arg1: i32) -> (i32, i32) {
    %c1_i32 = arith.constant 1 : i32
    %0 = arith.muli %arg0, %c1_i32 : i32
    %1 = arith.addi %0, %arg1 : i32
    %c0_i32 = arith.constant 0 : i32
    %c0_i32_0 = arith.constant 0 : i32
    return %1, %c0_i32 : i32, i32
  }
  func.func @transform_1(%arg0: i32, %arg1: i32) -> (i32, i32) {
    %c1_i32 = arith.constant 1 : i32
    %0 = arith.muli %arg0, %c1_i32 : i32
    %1 = arith.addi %0, %arg1 : i32
    %c0_i32 = arith.constant 0 : i32
    %c0_i32_0 = arith.constant 0 : i32
    return %1, %c0_i32 : i32, i32
  }
  func.func @transform_2(%arg0: i32, %arg1: i32) -> (i32, i32) {
    %c0_i32 = arith.constant 0 : i32
    %c0_i32_0 = arith.constant 0 : i32
    return %arg0, %c0_i32 : i32, i32
  }
}

</mosaic_0001>

<bundles_post_ra>
// kernel: tpu_custom_call.1
= control target key start
LH: loop header
LB: loop body
LE: loop exit
PB: predicated region body
PF: predicated region fallthrough
CT: control target
= control target key end

     0   :  { %7 = vsyncpa [#allocation4], 0  ;;  %s243_s0 = inlined_call_operand.hbm [shape: f32[1,128], index: 0, kind: input, shape index: {}]   ;;  %s244_s1 = inlined_call_operand.vmem [shape: f32[1,128], index: 1, kind: input, shape index: {}]   ;;  %s245_s2 = inlined_call_operand.hbm [shape: f32[1,1], index: 2, kind: output, shape index: {}]  }
   0x1   :  { %8 = vsyncpa [#allocation5], 0 }
   0x2   :  { %17 = vsyncadd [#allocation4], 112  ;;  %s197_s9 = smov [#allocation3]   ;;  %s149_s13 = scalar_lea.hbm %s243_s0, 16 }
   0x3   :  { %s21_s10 = sshll.u32 %s197_s9, 4  ;;  %p150_p0 = scmp.ne.s32.totalorder %s243_s0, %s149_s13  ;;  %s22_s10 = int_to_ptr.vmem [resolvable:$true] %s21_s10 }
   0x4   :  { %p153_p1 = scmp.lt.u32.totalorder %s149_s13, %s243_s0 }
   0x6   :  { %p155_p2 = pnand %p153_p1, %p150_p0 }
   0x8   :  { %158 = shalt.err (!%p155_p2)
}
   0x9   :  { %s159_s18 = scalar_lea.vmem %s22_s10, 16  ;;  %s163_s19 = scalar_lea.vmem %s22_s10, 128 }
   0xa   :  { %p160_p3 = scmp.ne.s32.totalorder %s22_s10, %s159_s18  ;;  %p164_p4 = scmp.lt.s32.totalorder %s22_s10, %s22_s10 }
   0xb   :  { %p165_p5 = scmp.lt.s32.totalorder %s163_s19, %s159_s18 }
   0xd   :  { %p166_p6 = por %p165_p5, %p164_p4 }
   0xf   :  { %p167_p7 = pnand %p166_p6, %p160_p3 }
  0x11   :  { %170 = shalt.err (!%p167_p7)
}
  0x12   :  { %s198_s20 = smov 16   ;;  %s199_s21 = smov 1  }
  0x13   :  { %27 = dma.hbm_to_vmem [thread:$0]  %s243_s0, 16, %s22_s10, [#allocation4], %s198_s20, %s198_s20, %s199_s21  }
  0x14   :  { %193 = dma.done.wait [#allocation4], 128  }
  0x15   :  { %194 = vsyncadd [#allocation4], 4294967168  ;;  %v75_v0 = vlaneseq  ;;  %v71_v2 = vld [vmem:[#allocation3] sm:$0xff]  ;;  %s200_s0 = smov [#allocation6]   ;;  %vm119_vm3 = vcmask 0  }
  0x16   :  { %v72_v3 = vld [vmem:[%s244_s1] sm:$0xff]  ;;  %s127_s1 = sshll.u32 %s200_s0, 4  ;;  %s128_s1 = int_to_ptr.vmem [resolvable:$true] %s127_s1 }
  0x17   :  { %v76_v1 = vshrl.u32 %v75_v0, 7  ;;  %s171_s27 = scalar_lea.vmem %s128_s1, 16  ;;  %s175_s28 = scalar_lea.vmem %s128_s1, 32 }
  0x18   :  { %p172_p8 = scmp.ne.s32.totalorder %s128_s1, %s171_s27  ;;  %p176_p9 = scmp.lt.s32.totalorder %s128_s1, %s128_s1 }
  0x19   :  { %vm79_vm0 = vcmp.lt.s32.totalorder %v76_v1, 1  ;;  %p177_p10 = scmp.lt.s32.totalorder %s175_s28, %s171_s27 }
  0x1a   :  { %v80_v4 = vsel %vm79_vm0, %v71_v2, 0.0  ;;  %v81_v5 = vsel %vm79_vm0, %v72_v3, 0.0 }
  0x1b   :  { %v82_v6 = vadd.f32 1.0, %v80_v4  ;;  %v91_v7 = vadd.f32 1.0, %v81_v5  ;;  %v85_v8 = vmul.f32 -0.5, %v80_v4  ;;  %v94_v9 = vmul.f32 -0.5, %v81_v5  ;;  %p178_p11 = por %p177_p10, %p176_p9 }
  0x1c   :  { %v88_v11 = vand.u32 2147483647, %v80_v4  ;;  %v97_v13 = vand.u32 2147483647, %v81_v5 }
  0x1d   :  { %145 = vlog2.f32 %v82_v6  ;;  %v86_v10 = vadd.f32 1.0, %v85_v8  ;;  %v95_v12 = vadd.f32 1.0, %v94_v9  ;;  %p179_p12 = pnand %p178_p11, %p172_p8 }
  0x1e   :  { %147 = vlog2.f32 %v91_v7  ;;  %vm89_vm1 = vcmp.lt.f32.partialorder %v88_v11, 0.0004427343  ;;  %vm98_vm2 = vcmp.lt.f32.partialorder %v97_v13, 0.0004427343 }
  0x1f   :  { %v87_v14 = vmul.f32 %v86_v10, %v80_v4  ;;  %v96_v16 = vmul.f32 %v95_v12, %v81_v5 }
  0x27   :  { %v146_v15 = vpop.eup %145 }
  0x28   :  { %v148_v17 = vpop.eup %147  ;;  %v84_v18 = vmul.f32 0.6931472, %v146_v15 }
  0x29   :  { %v93_v19 = vmul.f32 0.6931472, %v148_v17 }
  0x2a   :  { %v90_v20 = vsel %vm89_vm1, %v87_v14, %v84_v18 }
  0x2b   :  { %v99_v21 = vsel %vm98_vm2, %v96_v16, %v93_v19 }
  0x2c   :  { %v100_v22 = vsub.f32 %v90_v20, %v99_v21 }
  0x2e   :  { %v102_v23 = vmul.f32 %v100_v22, %v100_v22 }
  0x30   :  { %109 = vadd.xlane.f32.xlu0 %v102_v23 }
  0xbd   :  { %v110_v24 = vpop.xlane.xlu0 %109 }
  0xbe   :  { %v111_v25 = vrot.slane %v110_v24, 4 }
  0xc0   :  { %v112_v26 = vadd.f32 %v111_v25, %v110_v24 }
  0xc2   :  { %v113_v27 = vrot.slane %v112_v26, 2 }
  0xc4   :  { %v114_v28 = vadd.f32 %v113_v27, %v112_v26 }
  0xc6   :  { %v115_v29 = vrot.slane %v114_v28, 1 }
  0xc8   :  { %v116_v30 = vadd.f32 %v115_v29, %v114_v28 }
  0xca   :  { %139 = vpush %v116_v30 }
  0xfb   :  { %s140_s26 = spop %139 }
  0xfc   :  { %v118_v31 = vstv %s140_s26 }
  0xfd   :  { %120 = vst.msk [vmem:[#allocation6] sm:$0x1] %vm119_vm3, %v118_v31 }
  0xfe   :  { %182 = shalt.err (!%p179_p12)
}
  0xff   :  { %s183_s3 = scalar_lea.hbm %s245_s2, 16 }
 0x100   :  { %p184_p13 = scmp.ne.s32.totalorder %s245_s2, %s183_s3  ;;  %p187_p0 = scmp.lt.u32.totalorder %s183_s3, %s245_s2 }
 0x102   :  { %p189_p1 = pnand %p187_p0, %p184_p13 }
 0x104   :  { %192 = shalt.err (!%p189_p1)
}
 0x105   :  { %130 = dma.vmem_to_hbm [thread:$0]  %s128_s1, 16, %s245_s2, [#allocation5]  }
 0x106   :  { %195 = dma.done.wait [#allocation5], 16  }
 0x107   :  { %196 = vsyncadd [#allocation5], 4294967280 }
 0x108   :  { %134 = vsyncpa [#allocation4], 1 }
 0x109   :  { %135 = vsyncpa [#allocation5], 1 }

</bundles_post_ra>
